<compile_context>
chip_gen: v7x
topology: tpu7x:2x2x1
jax: 0.10.0
libtpu: 0.0.40
codegen_flags: <defaults>
</compile_context>

<pallas_src>
import functools

import jax
import jax.numpy as jnp
from jax.experimental import pallas as pl
from jax.experimental.pallas import tpu as pltpu


def _round_up(x, m):
    return (x + m - 1) // m * m


# -----------------------------------------------------------------------------
# Kernels
# -----------------------------------------------------------------------------
def _conv_bn_relu_single_k_kernel(w_ref, p_ref, shift_ref, o_ref):
    # Whole reduction fits in one tile: no scratch accumulator, no phase gating.
    # w_ref:     (tn, tk)    bf16  BN-scale-folded weight tile (C_out x C_in*K)
    # p_ref:     (1, tk, tl) bf16  im2col patch tile for this batch element
    # shift_ref: (tn, 1)     f32   folded BN shift (zeros if no BN)
    # o_ref:     (1, tn, tl) f32   output tile (channel-major, L_out on lanes)
    acc = jnp.dot(w_ref[...], p_ref[0], preferred_element_type=jnp.float32)
    o_ref[0] = jnp.maximum(acc + shift_ref[...], 0.0).astype(o_ref.dtype)


def _conv_bn_relu_multi_k_kernel(w_ref, p_ref, shift_ref, o_ref, acc_ref):
    # acc_ref: (tn, tl) f32 VMEM accumulator, resident across the K grid axis.
    k = pl.program_id(3)

    @pl.when(k == 0)
    def _():
        # Seed the accumulator with the folded BN shift (removes the epilogue add).
        acc_ref[...] = jnp.broadcast_to(shift_ref[...], acc_ref.shape)

    acc_ref[...] += jnp.dot(w_ref[...], p_ref[0],
                            preferred_element_type=jnp.float32)

    @pl.when(k == pl.num_programs(3) - 1)
    def _():
        o_ref[0] = jnp.maximum(acc_ref[...], 0.0).astype(o_ref.dtype)


# -----------------------------------------------------------------------------
# Wrapper
# -----------------------------------------------------------------------------
def basic_conv1d(x, weight, *, stride, padding, dilation,
                 bn_gamma=None, bn_beta=None, bn_mean=None, bn_var=None,
                 has_bn=False, eps=1e-3):
    """x: (N, C_in, L) f32; weight: (C_out, C_in, K) f32. Returns (N, C_out, L_out) f32."""
    N, C_in, L = x.shape
    C_out, _, K = weight.shape
    L_out = (L + 2 * padding - dilation * (K - 1) - 1) // stride + 1
    Kdim = C_in * K

    # ---- folded BN (inference form, matches PyTorch eval mode) ----
    if has_bn:
        scale = bn_gamma / jnp.sqrt(bn_var + eps)
        shift = bn_beta - bn_mean * scale
    else:
        scale = jnp.ones((C_out,), jnp.float32)
        shift = jnp.zeros((C_out,), jnp.float32)

    # Fold BN scale into the weight in f32 once, then cast to a bf16 MXU operand.
    w2d = (weight.reshape(C_out, Kdim) * scale[:, None]).astype(jnp.bfloat16)

    # ---- channel-major im2col via K strided slices (no gather), in bf16 ----
    # patches[n, ci*K + k, l] = x_pad[n, ci, l*stride + k*dilation]
    x_bf = x.astype(jnp.bfloat16)
    x_pad = jnp.pad(x_bf, ((0, 0), (0, 0), (padding, padding)))
    span = (L_out - 1) * stride + 1
    taps = [x_pad[:, :, k * dilation: k * dilation + span: stride] for k in range(K)]
    patches = jnp.stack(taps, axis=2).reshape(N, Kdim, L_out)        # (N, Kdim, L_out) bf16

    # ---- tile sizes: 8/128-aligned, comfortably inside scoped VMEM on v5e/v6e/v7x ----
    tn = min(256, _round_up(C_out, 8))        # C_out tile (sublane axis)
    tl = min(512, _round_up(L_out, 128))      # L_out tile (lane axis)
    tk = min(512, _round_up(Kdim, 128))       # reduction tile
    Cout_pad = _round_up(C_out, tn)
    Lout_pad = _round_up(L_out, tl)
    Kdim_pad = _round_up(Kdim, tk)

    w_p = jnp.pad(w2d, ((0, Cout_pad - C_out), (0, Kdim_pad - Kdim)))
    p_p = jnp.pad(patches, ((0, 0), (0, Kdim_pad - Kdim), (0, Lout_pad - L_out)))
    shift_p = jnp.pad(shift.astype(jnp.float32),
                      (0, Cout_pad - C_out)).reshape(Cout_pad, 1)

    num_k = Kdim_pad // tk
    grid_bnl = (N, Cout_pad // tn, Lout_pad // tl)

    flops = 2 * N * Cout_pad * Lout_pad * Kdim_pad
    bytes_accessed = (w_p.size * 2 * N * grid_bnl[2]
                      + p_p.size * 2 * grid_bnl[1]
                      + N * Cout_pad * Lout_pad * 4
                      + Cout_pad * 4)
    cost = pl.CostEstimate(flops=flops, transcendentals=0,
                           bytes_accessed=bytes_accessed)
    cparams = dict(vmem_limit_bytes=32 * 1024 * 1024)
    out_shape = jax.ShapeDtypeStruct((N, Cout_pad, Lout_pad), jnp.float32)

    if num_k == 1:
        out = pl.pallas_call(
            _conv_bn_relu_single_k_kernel,
            out_shape=out_shape,
            grid=grid_bnl,
            in_specs=[
                pl.BlockSpec((tn, tk), lambda b, j, l: (j, 0)),
                pl.BlockSpec((1, tk, tl), lambda b, j, l: (b, 0, l)),
                pl.BlockSpec((tn, 1), lambda b, j, l: (j, 0)),
            ],
            out_specs=pl.BlockSpec((1, tn, tl), lambda b, j, l: (b, j, l)),
            compiler_params=pltpu.CompilerParams(
                dimension_semantics=("parallel", "parallel", "parallel"),
                **cparams),
            cost_estimate=cost,
        )(w_p, p_p, shift_p)
    else:
        out = pl.pallas_call(
            _conv_bn_relu_multi_k_kernel,
            out_shape=out_shape,
            grid=grid_bnl + (num_k,),
            in_specs=[
                pl.BlockSpec((tn, tk), lambda b, j, l, k: (j, k)),
                pl.BlockSpec((1, tk, tl), lambda b, j, l, k: (b, k, l)),
                pl.BlockSpec((tn, 1), lambda b, j, l, k: (j, 0)),
            ],
            out_specs=pl.BlockSpec((1, tn, tl), lambda b, j, l, k: (b, j, l)),
            scratch_shapes=[pltpu.VMEM((tn, tl), jnp.float32)],
            compiler_params=pltpu.CompilerParams(
                dimension_semantics=("parallel", "parallel", "parallel",
                                     "arbitrary"),
                **cparams),
            cost_estimate=cost,
        )(w_p, p_p, shift_p)

    # Output is already NCL (channel-major, lane-dense on L_out); just crop padding.
    return out[:, :C_out, :L_out]


# -----------------------------------------------------------------------------
# Reference (mirrors the kernel's bf16 operand rounding, f32 accumulation)
# -----------------------------------------------------------------------------
def _reference(x, weight, *, stride, padding, dilation,
               bn_gamma, bn_beta, bn_mean, bn_var, has_bn, eps=1e-3):
    C_out = weight.shape[0]
    if has_bn:
        scale = bn_gamma / jnp.sqrt(bn_var + eps)
        shift = bn_beta - bn_mean * scale
    else:
        scale = jnp.ones((C_out,), jnp.float32)
        shift = jnp.zeros((C_out,), jnp.float32)
    w_folded = (weight * scale[:, None, None]).astype(jnp.bfloat16).astype(jnp.float32)
    x_bf = x.astype(jnp.bfloat16).astype(jnp.float32)
    y = jax.lax.conv_general_dilated(
        x_bf, w_folded,
        window_strides=(stride,),
        padding=[(padding, padding)],
        rhs_dilation=(dilation,),
        dimension_numbers=("NCH", "OIH", "NCH"),
        precision=jax.lax.Precision.HIGHEST)
    y = y + shift[None, :, None]
    return jnp.maximum(y, 0.0)


if __name__ == "__main__":
    key = jax.random.PRNGKey(0)
    k1, k2, k3, k4, k5, k6 = jax.random.split(key, 6)

    # ---- case 1: BasicConv1d(4, 8, kernel_size=3, stride=1, padding=1, hasBN=True) ----
    N, C_in, L = 2, 4, 16
    C_out, K, stride, padding, dilation = 8, 3, 1, 1, 1
    has_bn = True

    x = jax.random.normal(k1, (N, C_in, L), jnp.float32)
    weight = jax.random.normal(k2, (C_out, C_in, K), jnp.float32) * 0.1
    bn_gamma = jax.random.normal(k3, (C_out,), jnp.float32) * 0.1 + 1.0
    bn_beta = jax.random.normal(k4, (C_out,), jnp.float32) * 0.1
    bn_mean = jax.random.normal(k5, (C_out,), jnp.float32) * 0.1
    bn_var = jax.nn.softplus(jax.random.normal(k6, (C_out,), jnp.float32)) + 0.5

    run = functools.partial(
        basic_conv1d, stride=stride, padding=padding, dilation=dilation,
        bn_gamma=bn_gamma, bn_beta=bn_beta, bn_mean=bn_mean, bn_var=bn_var,
        has_bn=has_bn)
    out = jax.block_until_ready(jax.jit(run)(x, weight))
    ref = _reference(x, weight, stride=stride, padding=padding, dilation=dilation,
                     bn_gamma=bn_gamma, bn_beta=bn_beta, bn_mean=bn_mean,
                     bn_var=bn_var, has_bn=has_bn)
    assert out.shape == (N, C_out, L), f"bad shape {out.shape}"
    assert jnp.allclose(out, ref, atol=1e-3, rtol=1e-3), "mismatch vs reference (case 1)"

    # ---- case 2: exercises the multi-K-tile (accumulator) path, no BN ----
    N2, C_in2, L2 = 2, 192, 24
    C_out2, K2, stride2, padding2, dilation2 = 16, 3, 2, 1, 1
    x2 = jax.random.normal(k1, (N2, C_in2, L2), jnp.float32)
    w2 = jax.random.normal(k2, (C_out2, C_in2, K2), jnp.float32) * 0.05

    run2 = functools.partial(basic_conv1d, stride=stride2, padding=padding2,
                             dilation=dilation2, has_bn=False)
    out2 = jax.block_until_ready(jax.jit(run2)(x2, w2))
    ref2 = _reference(x2, w2, stride=stride2, padding=padding2, dilation=dilation2,
                      bn_gamma=None, bn_beta=None, bn_mean=None, bn_var=None,
                      has_bn=False)
    assert out2.shape == ref2.shape, f"bad shape {out2.shape}"
    assert jnp.allclose(out2, ref2, atol=5e-3, rtol=5e-3), "mismatch vs reference (case 2)"

    print("KERNEL_OK")
</pallas_src>

<mosaic_0001>
module attributes {stable_mosaic.version = 11 : i64} {
  func.func @_conv_bn_relu_single_k_kernel(%arg0: i32, %arg1: i32, %arg2: i32, %arg3: memref<8x128xbf16, #tpu.memory_space<vmem>>, %arg4: memref<1x128x128xbf16, #tpu.memory_space<vmem>>, %arg5: memref<8x1xf32, #tpu.memory_space<vmem>>, %arg6: memref<1x8x128xf32, #tpu.memory_space<vmem>>) attributes {dimension_semantics = [#tpu.dimension_semantics<parallel>, #tpu.dimension_semantics<parallel>, #tpu.dimension_semantics<parallel>], iteration_bounds = array<i64: 2, 1, 1>, scalar_prefetch = 0 : i64, scratch_operands = 0 : i64, tpu.core_type = #tpu.core_type<tc>, window_params = [{transform_indices = @transform_0, window_bounds = array<i64: 8, 128>}, {transform_indices = @transform_1, window_bounds = array<i64: 1, 128, 128>}, {transform_indices = @transform_2, window_bounds = array<i64: 8, 1>}, {transform_indices = @transform_3, window_bounds = array<i64: 1, 8, 128>}]} {
    %c0 = arith.constant 0 : index
    %c0_0 = arith.constant 0 : index
    %0 = vector.load %arg3[%c0, %c0_0] : memref<8x128xbf16, #tpu.memory_space<vmem>>, vector<8x128xbf16>
    %c0_1 = arith.constant 0 : index
    %c0_2 = arith.constant 0 : index
    %c0_3 = arith.constant 0 : index
    %1 = vector.load %arg4[%c0_1, %c0_2, %c0_3] : memref<1x128x128xbf16, #tpu.memory_space<vmem>>, vector<1x128x128xbf16>
    %2 = vector.shape_cast %1 : vector<1x128x128xbf16> to vector<128x128xbf16>
    %cst = arith.constant dense<0.000000e+00> : vector<8x128xf32>
    %3 = tpu.matmul %0, %2, %cst {dimension_numbers = #tpu.dot_dimension_numbers<[1], [0], [0], [1], [0, 0, 1, 1], [], []>} : vector<8x128xbf16>, vector<128x128xbf16>, vector<8x128xf32> -> vector<8x128xf32>
    %c0_4 = arith.constant 0 : index
    %c0_5 = arith.constant 0 : index
    %4 = vector.load %arg5[%c0_4, %c0_5] : memref<8x1xf32, #tpu.memory_space<vmem>>, vector<8x1xf32>
    %5 = vector.broadcast %4 : vector<8x1xf32> to vector<8x128xf32>
    %6 = arith.addf %3, %5 : vector<8x128xf32>
    %cst_6 = arith.constant 0.000000e+00 : f32
    %7 = vector.broadcast %cst_6 : f32 to vector<8x128xf32>
    %8 = arith.maximumf %6, %7 : vector<8x128xf32>
    %c0_7 = arith.constant 0 : index
    %c0_8 = arith.constant 0 : index
    %c0_9 = arith.constant 0 : index
    %9 = vector.load %arg6[%c0_7, %c0_8, %c0_9] : memref<1x8x128xf32, #tpu.memory_space<vmem>>, vector<1x8x128xf32>
    %10 = vector.shape_cast %9 : vector<1x8x128xf32> to vector<8x128xf32>
    %11 = vector.shape_cast %8 : vector<8x128xf32> to vector<1x8x128xf32>
    tpu.vector_store %arg6[%c0_7, %c0_8, %c0_9], %11 {strides = array<i32>} : memref<1x8x128xf32, #tpu.memory_space<vmem>>, vector<1x8x128xf32>,
    return
  }
  func.func @transform_0(%arg0: i32, %arg1: i32, %arg2: i32) -> (i32, i32) {
    %c0_i32 = arith.constant 0 : i32
    %c0_i32_0 = arith.constant 0 : i32
    return %arg1, %c0_i32 : i32, i32
  }
  func.func @transform_1(%arg0: i32, %arg1: i32, %arg2: i32) -> (i32, i32, i32) {
    %c0_i32 = arith.constant 0 : i32
    %c0_i32_0 = arith.constant 0 : i32
    return %arg0, %c0_i32, %arg2 : i32, i32, i32
  }
  func.func @transform_2(%arg0: i32, %arg1: i32, %arg2: i32) -> (i32, i32) {
    %c0_i32 = arith.constant 0 : i32
    %c0_i32_0 = arith.constant 0 : i32
    return %arg1, %c0_i32 : i32, i32
  }
  func.func @transform_3(%arg0: i32, %arg1: i32, %arg2: i32) -> (i32, i32, i32) {
    %c0_i32 = arith.constant 0 : i32
    return %arg0, %arg1, %arg2 : i32, i32, i32
  }
}

</mosaic_0001>

<bundles_post_ra>
// kernel: basic_conv1d.1
= control target key start
LH: loop header
LB: loop body
LE: loop exit
PB: predicated region body
PF: predicated region fallthrough
CT: control target
= control target key end

     0   :  { %8 = vsyncpa [#allocation3], 0  ;;  %s816_s0 = inlined_call_operand.vmem [shape: bf16[8,128], index: 0, kind: input, shape index: {}]   ;;  %s817_s1 = inlined_call_operand.vmem [shape: bf16[2,128,128], index: 1, kind: input, shape index: {}]   ;;  %s818_s2 = inlined_call_operand.vmem [shape: f32[8,1], index: 2, kind: input, shape index: {}]   ;;  %s819_s3 = inlined_call_operand.hbm [shape: f32[2,8,128], index: 3, kind: output, shape index: {}]  }
   0x1   :  { %10 = vsyncpa [#allocation3 + $0x1], 0  ;;  %s698_s12 = smov 0   ;;  %s700_s13 = smov 0  }
   0x2   :  { %s702_s14 = smov 0   ;;  %s704_s15 = smov 0  }
   0x3   :  { %s706_s16 = smov 0   ;;  %s708_s17 = smov 0  }
   0x4 LB: > { %s475_s18 = sadd.s32 4294967295, %s672_s17   ;;  %s476_s19 = sadd.s32 4294967294, %s672_s17   ;;  %s672_s17 = sphi %s708_s17, %s16_s17   ;;  %s668_s16 = sphi %s706_s16, %s826_s16   ;;  %s664_s15 = sphi %s704_s15, %s825_s15   ;;  %s660_s14 = sphi %s702_s14, %s824_s14   ;;  %s656_s13 = sphi %s700_s13, %s823_s13   ;;  %s652_s12 = sphi %s698_s12, %s822_s12  }
   0x5   : > { %s35_s20 = sadd.s32 1, %s668_s16  ;;  %s126_s21 = sadd.s32 1, %s660_s14 }
   0x6   : > { %p37_p0 = scmp.ge.s32.totalorder %s35_s20, 2  ;;  %p136_p1 = scmp.ne.s32.totalorder %s660_s14, %s656_s13 }
   0x7   : > { %p137_p2 = scmp.eq.s32.totalorder %s475_s18, 1  ;;  %p142_p3 = scmp.ne.s32.totalorder %s656_s13, %s652_s12 }
   0x8   : > { %s828_s20 = smov (%p37_p0, %s35_s20), 0  ;;  %p143_p5 = scmp.eq.s32.totalorder %s476_s19, 1 }
   0x9   : > { %p738_p4 = por %p137_p2, %p136_p1  ;;  %s119_s23 = ssub.s32 %s668_s16, %s828_s20 }
   0xa   : > { %p481_p6 = scmp.ge.s32.totalorder %s672_s17, 1  ;;  %p124_p7 = scmp.eq.s32.totalorder %s119_s23, 0 }
   0xb   : > { %p745_p8 = por %p143_p5, %p142_p3  ;;  %p186_p9 = scmp.lt.s32.totalorder %s672_s17, 3 }
   0xc   : > { %s751_s25 = scalar_select %p124_p7, %s660_s14, %s126_s21  }
   0xd   : > { %p187_p10 = pnand %p481_p6, %p186_p9 }
   0xe   : > { %p225_p11 = scmp.lt.s32.totalorder (!%p187_p10), %s664_s15, 1  ;;  %v674_v0 = vmov (!%p187_p10), 0.0   ;;  %vm675_vm0 = vmmov (!%p187_p10), 0   ;;  %v255_v1 = vld [vmem:[%s818_s2] sm:$0xff] (!%p187_p10)  ;;  %v676_v2 = vmov (!%p187_p10), 0   ;;  %s218_s8 = sand.u32 (!%p187_p10), 1, %s656_s13  }
   0xf   : > { %190 = sbr.rel (%p187_p10) target bundleno = 288 (0x120), region = 32  ;;  %507 = vmatprep.subr.bf16.mxu0 (!%p187_p10), %v674_v0  ;;  %523 = vmatprep.mubr.msk.bf16.mxu0 (!%p187_p10), %vm675_vm0, %v674_v0  ;;  %v238_v11 = vld [vmem:[%s816_s0] sm:$0xf] (!%p187_p10)  ;;  %s482_s9 = sshll.u32 (!%p187_p10), %s218_s8, 3 }
  0x10   : > { %585 = vset.pattern.permute.xlu0 (!%p187_p10), %v676_v2  ;;  %s494_s10 = sshll.u32 (!%p187_p10), %s664_s15, 7  ;;  %s220_s11 = scalar_lea.vmem (!%p187_p10), [#allocation2], %s482_s9 }
  0x11   : > { %258 = vperm.xlu0 (!%p187_p10), %585, %v255_v1   ;;  %s367_s18 = sshll.u32 (!%p187_p10), %s220_s11, 4  ;;  %s769_s23 = scalar_lea.hbm (!%p187_p10), %s819_s3, %s494_s10  ;;  %s771_s18 = int_to_ptr.vmem [resolvable:$true] %s367_s18 }
  0x12   : > { %s352_s26 = scalar_lea.sflag (!%p187_p10), [#allocation3], %s218_s8  ;;  %s677_s27 = smov (!%p187_p10), [#allocation2]  }
  0x16   : > { %s226_s28 = scalar_select %p225_p11, %s664_s15, 1 }
  0x17   : > { %s594_s15 = scalar_lea.vmem %s771_s18, 128 }
  0x18   : > { %s497_s29 = sshll.u32 %s226_s28, 6  ;;  %p595_p12 = scmp.ne.s32.totalorder %s771_s18, %s594_s15 }
  0x19   : > { %s232_s5 = scalar_lea.vmem %s817_s1, %s497_s29  ;;  %s598_s28 = sshll.u32 %s677_s27, 4  ;;  %s599_s28 = int_to_ptr.vmem [resolvable:$false] %s598_s28 }
  0x1a   : > { %v586_v3 = vld [vmem:[%s232_s5] sm:$0xff]   ;;  %v587_v4 = vld [vmem:[%s232_s5 + $0x8] sm:$0xff]   ;;  %v588_v5 = vld [vmem:[%s232_s5 + $0x10] sm:$0xff]   ;;  %p596_p13 = pnand %p595_p12, %p738_p4  ;;  %s600_s29 = scalar_lea.vmem %s599_s28, 256 }
  0x1b   : > { %508 = vmatpush3.bf16.msra.mxu0 %v586_v3  ;;  %v589_v6 = vld [vmem:[%s232_s5 + $0x18] sm:$0xff]   ;;  %v590_v7 = vld [vmem:[%s232_s5 + $0x20] sm:$0xff]   ;;  %v591_v8 = vld [vmem:[%s232_s5 + $0x28] sm:$0xff]   ;;  %p601_p1 = scmp.lt.s32.totalorder %s771_s18, %s599_s28  ;;  %p602_p2 = scmp.lt.s32.totalorder %s600_s29, %s594_s15 }
  0x1c   : > { %509 = vmatprep.subr.bf16.mxu0 %v674_v0  ;;  %v592_v9 = vld [vmem:[%s232_s5 + $0x30] sm:$0xff]   ;;  %v593_v10 = vld [vmem:[%s232_s5 + $0x38] sm:$0xff]   ;;  %p597_p0 = pneg %p596_p13 }
  0x1d   : > { %p603_p3 = por %p602_p2, %p601_p1 }
  0x1f   : > { %510 = vmatpush3.bf16.msra.mxu0 %v587_v4  ;;  %p604_p5 = pnand %p603_p3, %p597_p0 }
  0x20   : > { %511 = vmatprep.subr.bf16.mxu0 %v674_v0 }
  0x23   : > { %512 = vmatpush3.bf16.msra.mxu0 %v588_v5 }
  0x24   : > { %513 = vmatprep.subr.bf16.mxu0 %v674_v0 }
  0x27   : > { %514 = vmatpush3.bf16.msra.mxu0 %v589_v6 }
  0x28   : > { %515 = vmatprep.subr.bf16.mxu0 %v674_v0 }
  0x2b   : > { %516 = vmatpush3.bf16.msra.mxu0 %v590_v7 }
  0x2c   : > { %517 = vmatprep.subr.bf16.mxu0 %v674_v0 }
  0x2f   : > { %518 = vmatpush3.bf16.msra.mxu0 %v591_v8 }
  0x30   : > { %519 = vmatprep.subr.bf16.mxu0 %v674_v0 }
  0x33   : > { %520 = vmatpush3.bf16.msra.mxu0 %v592_v9 }
  0x34   : > { %521 = vmatprep.subr.bf16.mxu0 %v674_v0 }
  0x37   : > { %522 = vmatpush3.bf16.msra.mxu0 %v593_v10 }
  0x3a   : > { %524 = vmatmul.mubr.bf16.vlgmr.msra.gmra.mrb[0].mxu0 %v238_v11 }
  0x90   : > { %v259_v12 = vpop.permute.xlu0 %258 }
 0x10d   : > { %v343_v13 = vpop.f32.mrb[0].mxu0 }
 0x10e   : > { %v344_v14 = vadd.f32 %v343_v13, %v259_v12  ;;  %v525_v15 = vpop.f32.mrb[1].mxu0 }
 0x10f   : > { %v346_v16 = vpop.f32.mrb[2].mxu0 }
 0x110   : > { %v349_v17 = vmax.f32 %v344_v14, 0.0  ;;  %v526_v18 = vpop.f32.mrb[3].mxu0 }
 0x112   : > { %350 = vst [vmem:[%s220_s11] sm:$0xff] %v349_v17 }
 0x113   : > { %607 = shalt.err (!%p604_p5)
}
 0x114   : > { %s608_s30 = scalar_lea.hbm %s769_s23, 128  ;;  %s612_s6 = scalar_lea.hbm %s819_s3, 256 }
 0x115   : > { %p609_p6 = scmp.ne.s32.totalorder %s769_s23, %s608_s30  ;;  %p613_p10 = scmp.lt.u32.totalorder %s769_s23, %s819_s3 }
 0x116   : > { %p614_p11 = scmp.lt.u32.totalorder %s612_s6, %s608_s30  ;;  %p616_p13 = scmp.lt.u32.totalorder %s608_s30, %s769_s23 }
 0x117   : > { %p610_p7 = pnand %p609_p6, %p738_p4 }
 0x118   : > { %p615_p12 = por %p614_p11, %p613_p10 }
 0x119   : > { %p611_p9 = pneg %p610_p7 }
 0x11a   : > { %p617_p0 = por %p616_p13, %p615_p12 }
 0x11c   : > { %p618_p1 = pnand %p617_p0, %p611_p9 }
 0x11e   : > { %621 = shalt.err (!%p618_p1)
}
 0x11f   : > { %527 = dma.vmem_to_hbm [thread:$0]  (%p738_p4), %s771_s18, 128, %s769_s23, %s352_s26  }
 0x120 PF: > { %p533_p2 = scmp.ge.s32.totalorder %s672_s17, 2  ;;  %s379_s9 = sand.u32 1, %s652_s12  }
 0x121   : > { %s380_s10 = scalar_lea.sflag [#allocation3], %s379_s9 }
 0x122   : > { %p530_p3 = pnand %p533_p2, %p745_p8 }
 0x124   : > { %647 = dma.done.wait (!%p530_p3), %s380_s10, 128  }
 0x125   : > { %649 = vsyncadd (!%p530_p3), %s380_s10, 4294967168  ;;  %s16_s17 = sadd.s32 1, %s672_s17   ;;  %s822_s12 = smov %s656_s13 }
 0x126   : > { %p13_p5 = scmp.ge.s32.totalorder %s16_s17, 4   ;;  %s823_s13 = smov %s660_s14 }
 0x127   : > { %s824_s14 = smov %s751_s25  ;;  %s825_s15 = smov %s668_s16 }
 0x128   : > { %s826_s16 = smov %s828_s20  ;;  %15 = sbr.rel (!%p13_p5) target bundleno = 4 (0x4), region = 73 }
 0x12f   :  { %385 = vsyncpa [#allocation3], 1 }
 0x130   :  { %387 = vsyncpa [#allocation3 + $0x1], 1 }

</bundles_post_ra>
